<compile_context>
chip_gen: v5e
topology: v5e:2x2
jax: 0.10.0
libtpu: 0.0.40
codegen_flags: <defaults>
</compile_context>

<pallas_src>
import jax
import jax.numpy as jnp
from jax.experimental import pallas as pl
from jax.experimental.pallas import tpu as pltpu


def _channel_split_kernel(x_ref, s1_ref, s2_ref):
    # torch.split(v1, [1, 2], dim=1) -> channels [0:1] and [1:3].
    # Static Ref slices -> straight vld/vst of exactly the bytes each output needs.
    s1_ref[...] = x_ref[:, 0:1, :]
    s2_ref[...] = x_ref[:, 1:3, :]


def model_forward(v1):
    """Reproduces Model.forward: returns (concatenated_tensor, (split_c1, split_c2))."""
    N, C, H, W = v1.shape
    assert N == 2 and C == 3, "forward semantics require dim0==2, dim1==3"
    HW = H * W

    # Lane-dense view: last dim H*W (=256 for 16x16) is a multiple of 128.
    x = v1.reshape(N, C, HW)

    # Whole-array, untiled VMEM specs: grid=() means there is nothing to
    # pipeline, so explicit block_shape/index_map buys nothing.
    vmem_spec = pl.BlockSpec(memory_space=pltpu.MemorySpace.VMEM)

    itemsize = jnp.dtype(v1.dtype).itemsize
    bytes_accessed = 2 * N * C * HW * itemsize  # read input + write both outputs

    s1, s2 = pl.pallas_call(
        _channel_split_kernel,
        out_shape=(
            jax.ShapeDtypeStruct((N, 1, HW), v1.dtype),
            jax.ShapeDtypeStruct((N, 2, HW), v1.dtype),
        ),
        in_specs=[vmem_spec],
        out_specs=(vmem_spec, vmem_spec),
        cost_estimate=pl.CostEstimate(
            flops=0, transcendentals=0, bytes_accessed=bytes_accessed
        ),
    )(x)

    s1 = s1.reshape(N, 1, H, W)
    s2 = s2.reshape(N, 2, H, W)

    # torch.cat(torch.split(v1, [1, 1], dim=0), dim=0) is the identity on v1;
    # return v1 directly instead of copying it through the kernel.
    concatenated_tensor = v1
    return concatenated_tensor, (s1, s2)


if __name__ == "__main__":
    key = jax.random.PRNGKey(0)
    # Input implied by forward(): batch=2 (split [1,1] on dim 0), channels=3
    # (split [1,2] on dim 1), small spatial 16x16.
    v1 = jax.random.normal(key, (2, 3, 16, 16), dtype=jnp.float32)

    cat, (s1, s2) = model_forward(v1)
    jax.block_until_ready((cat, s1, s2))

    # Sanity check against the reference semantics.
    assert jnp.array_equal(cat, v1)
    assert jnp.array_equal(s1, v1[:, 0:1])
    assert jnp.array_equal(s2, v1[:, 1:3])

    print("KERNEL_OK")
</pallas_src>

<mosaic_0001>
module attributes {stable_mosaic.version = 11 : i64} {
  func.func @_channel_split_kernel(%arg0: memref<2x3x256xf32, #tpu.memory_space<vmem>>, %arg1: memref<2x1x256xf32, #tpu.memory_space<vmem>>, %arg2: memref<2x2x256xf32, #tpu.memory_space<vmem>>) attributes {dimension_semantics = [], scalar_prefetch = 0 : i64, scratch_operands = 0 : i64, tpu.core_type = #tpu.core_type<tc>} {
    %c0 = arith.constant 0 : index
    %c0_0 = arith.constant 0 : index
    %c0_1 = arith.constant 0 : index
    %0 = vector.load %arg0[%c0, %c0_0, %c0_1] : memref<2x3x256xf32, #tpu.memory_space<vmem>>, vector<2x1x256xf32>
    %c0_2 = arith.constant 0 : index
    %c0_3 = arith.constant 0 : index
    %c0_4 = arith.constant 0 : index
    %1 = vector.load %arg1[%c0_2, %c0_3, %c0_4] : memref<2x1x256xf32, #tpu.memory_space<vmem>>, vector<2x1x256xf32>
    tpu.vector_store %arg1[%c0_2, %c0_3, %c0_4], %0 {strides = array<i32>} : memref<2x1x256xf32, #tpu.memory_space<vmem>>, vector<2x1x256xf32>,
    %c0_5 = arith.constant 0 : index
    %c1 = arith.constant 1 : index
    %c0_6 = arith.constant 0 : index
    %2 = vector.load %arg0[%c0_5, %c1, %c0_6] : memref<2x3x256xf32, #tpu.memory_space<vmem>>, vector<2x2x256xf32>
    %c0_7 = arith.constant 0 : index
    %c0_8 = arith.constant 0 : index
    %c0_9 = arith.constant 0 : index
    %3 = vector.load %arg2[%c0_7, %c0_8, %c0_9] : memref<2x2x256xf32, #tpu.memory_space<vmem>>, vector<2x2x256xf32>
    tpu.vector_store %arg2[%c0_7, %c0_8, %c0_9], %2 {strides = array<i32>} : memref<2x2x256xf32, #tpu.memory_space<vmem>>, vector<2x2x256xf32>,
    return
  }
}

</mosaic_0001>

<bundles_post_ra>
// kernel: tpu_custom_call.1
= control target key start
LH: loop header
LB: loop body
LE: loop exit
PB: predicated region body
PF: predicated region fallthrough
CT: control target
= control target key end

     0   :  { %8 = vsyncpa [#allocation3], 0  ;;  %v15_v1 = vlaneseq  ;;  %vm27_vm0 = vcmask 1041408   ;;  %vm29_vm1 = vcmask 1043458   ;;  %vm35_vm2 = vcmask 1040384   ;;  %s153_s20 = smov [#allocation2]   ;;  %s204_s0 = inlined_call_operand.vmem [shape: f32[2,3,256], index: 0, kind: input, shape index: {}]   ;;  %s205_s1 = inlined_call_operand.hbm [shape: f32[2,1,256], index: 1, kind: output, shape index: {0}]   ;;  %s206_s2 = inlined_call_operand.hbm [shape: f32[2,2,256], index: 2, kind: output, shape index: {1}]  }
   0x1   :  { %v12_v0 = vld [vmem:[%s204_s0] ss:$4 sm:$0x3]  ;;  %v90_v2 = vld [vmem:[%s204_s0 + $0x8] ss:$4 sm:$0x3] }
   0x2   :  { %v21_v3 = vld [vmem:[%s204_s0] sm:$0x66]  ;;  %vm36_vm3 = vcmask 1042434   ;;  %vm17_vm4 = vcmp.lt.s32.totalorder %v15_v1, 256  ;;  %vm38_vm6 = vcmask 1044484   ;;  %vm40_vm7 = vcmask 1046534  }
   0x3   :  { %v25_v4 = vrot.slane %v21_v3, 2  ;;  %vm37_vm5 = vmor %vm35_vm2, %vm36_vm3  ;;  %v22_v5 = vld [vmem:[%s204_s0 + $0x8] sm:$0x66]  ;;  %19 = vst.msk [vmem:[#allocation2] sm:$0x3] %vm17_vm4, %v12_v0  ;;  %s60_s19 = sshll.u32 %s205_s1, 4  ;;  %s61_s19 = int_to_ptr.hbm [resolvable:$true] %s60_s19 }
   0x4   :  { %vm39_vm8 = vmor %vm37_vm5, %vm38_vm6  ;;  %v26_v6 = vrot.slane %v22_v5, 2  ;;  %20 = vst.msk [vmem:[#allocation2 + $0x2] sm:$0x3] %vm17_vm4, %v90_v2  ;;  %s58_s21 = sshll.u32 %s153_s20, 4  ;;  %s59_s21 = int_to_ptr.vmem [resolvable:$true] %s58_s21 }
   0x5   :  { %v28_v7 = vsel %vm27_vm0, %v21_v3, %v25_v4  ;;  %v30_v8 = vsel %vm29_vm1, %v21_v3, %v25_v4  ;;  %vm191_vm9 = vmor %vm39_vm8, %vm40_vm7 }
   0x6   :  { %v91_v10 = vrot.slane %v28_v7, 9  ;;  %v92_v11 = vrot.slane %v30_v8, 9  ;;  %v32_v12 = vsel %vm27_vm0, %v22_v5, %v26_v6  ;;  %v33_v13 = vsel %vm29_vm1, %v22_v5, %v26_v6 }
   0x7   :  { %9 = vsyncpa [#allocation5], 0  ;;  %v93_v14 = vrot.slane %v32_v12, 9  ;;  %v94_v15 = vrot.slane %v33_v13, 9  ;;  %s154_s0 = smov 32   ;;  %s155_s1 = smov 2  }
   0x8   :  { %v45_v16 = vsel %vm191_vm9, %v91_v10, %v92_v11  ;;  %66 = dma.vmem_to_hbm [thread:$0]  %s59_s21, 64, %s61_s19, [#allocation3], %s154_s0, %s154_s0, %s155_s1  }
   0x9   :  { %52 = vst [vmem:[#allocation4] sm:$0xf] %v45_v16  ;;  %v49_v17 = vsel %vm191_vm9, %v93_v14, %v94_v15  ;;  %s156_s22 = smov [#allocation4]   ;;  %s73_s26 = sshll.u32 %s206_s2, 4  ;;  %s74_s26 = int_to_ptr.hbm [resolvable:$true] %s73_s26 }
   0xa   :  { %s71_s23 = sshll.u32 %s156_s22, 4  ;;  %53 = vst [vmem:[#allocation4 + $0x4] sm:$0xf] %v49_v17  ;;  %s157_s27 = smov 64   ;;  %s72_s23 = int_to_ptr.vmem [resolvable:$true] %s71_s23 }
   0xb   :  { %s158_s28 = smov 4  }
   0xc   :  { %79 = dma.vmem_to_hbm [thread:$0]  %s72_s23, 128, %s74_s26, [#allocation5], %s157_s27, %s157_s27, %s158_s28  }
   0xd   :  { %149 = dma.done.wait [#allocation3], 64  }
   0xe   :  { %150 = vsyncadd [#allocation3], 4294967232 }
   0xf   :  { %151 = dma.done.wait [#allocation5], 128  }
  0x10   :  { %152 = vsyncadd [#allocation5], 4294967168 }
  0x11   :  { %88 = vsyncpa [#allocation3], 1 }
  0x12   :  { %89 = vsyncpa [#allocation5], 1 }

</bundles_post_ra>
